<compile_context>
chip_gen: v7x
topology: tpu7x:2x2x1
jax: 0.10.0
libtpu: 0.0.40
codegen_flags: <defaults>
</compile_context>

<pallas_src>
import functools

import jax
import jax.numpy as jnp
from jax.experimental import pallas as pl
from jax.experimental.pallas import tpu as pltpu


def _round_up(x, m):
    return ((x + m - 1) // m) * m


def goal_encoder_kernel(x_ref, w_ref, b_ref, o_ref):
    # x_ref: (TB, K)  goals tile, streamed in its original dtype (f32 or bf16)
    # w_ref: (K, H)   full weight (bf16), resident across batch tiles
    # b_ref: (1, H)   f32 bias row, resident
    # o_ref: (TB, H)  output tile (f32 by default, optionally bf16)
    x = x_ref[...].astype(w_ref.dtype)            # in-VMEM cast, no extra HBM pass
    acc = jnp.dot(x, w_ref[...], preferred_element_type=jnp.float32)
    o_ref[...] = jnp.maximum(acc + b_ref[...], 0.0).astype(o_ref.dtype)


def prepare_goal_encoder_params(weight, bias, *, param_dtype=jnp.bfloat16):
    """One-time (module-init / param-load) prep.

    weight: [1024, H] f32  -> [1024, H] `param_dtype` (bf16 halves the weight DMA)
    bias:   [H]       f32  -> [1, H]    f32 (kept f32; bias add + ReLU stay f32)
    """
    w = weight.astype(param_dtype)
    b = bias.reshape(1, -1).astype(jnp.float32)
    return w, b


def goal_encoder_forward(goals, w_prepped, b_prepped, *, tb=None,
                         out_dtype=jnp.float32, min_pallas_batch=0,
                         vmem_limit_bytes=None):
    """ReLU(goals @ W + b) with an f32 accumulator.

    goals:     [B, 1024] (f32 or bf16 -- streamed as-is, cast to W's dtype in-kernel)
    w_prepped: [1024, H] (from prepare_goal_encoder_params, typically bf16)
    b_prepped: [1, H]    f32
    returns:   [B, H]    `out_dtype` (f32 default; bf16 halves writeback)
    """
    B, K = goals.shape
    K2, H = w_prepped.shape
    assert K == K2, (K, K2)
    assert b_prepped.shape == (1, H), b_prepped.shape

    # Tiny batches (e.g. literal BabyAI B=8) are pure launch overhead as a
    # standalone kernel -- let XLA fuse them with the goals producer instead.
    if B < min_pallas_batch:
        acc = jnp.dot(goals.astype(w_prepped.dtype), w_prepped,
                      preferred_element_type=jnp.float32)
        return jnp.maximum(acc + b_prepped, 0.0).astype(out_dtype)

    # --- batch tile selection (sublane multiple: 8 rows f32, 16 rows bf16).
    row_mult = 16 if goals.dtype == jnp.dtype(jnp.bfloat16) else 8
    if tb is None:
        # Double-buffered x tile stays <= ~8 MiB so the whole working set fits
        # v5e's 16 MiB default scoped VMEM without flags (v6e/v7x have more
        # headroom; pass a larger tb + vmem_limit_bytes there if desired).
        tb = 2048 if goals.dtype == jnp.dtype(jnp.bfloat16) else 1024
    if tb >= B:
        if B >= 2 * row_mult:
            # Keep >= 2 grid steps so the "parallel" batch axis can actually
            # shard across v7x's two TensorCores (and v6e megacore).
            tb = _round_up(pl.cdiv(B, 2), row_mult)
        else:
            tb = B                      # single full-extent block (always legal)
    else:
        tb = _round_up(tb, row_mult)

    grid = (pl.cdiv(B, tb),)

    # Advisory cost hint: lets XLA overlap this bandwidth-bound kernel with the
    # (much heavier) upstream goals producer.
    bytes_accessed = (B * K * goals.dtype.itemsize
                      + K * H * w_prepped.dtype.itemsize
                      + H * 4
                      + B * H * jnp.dtype(out_dtype).itemsize)
    cost = pl.CostEstimate(flops=2 * B * K * H, transcendentals=0,
                           bytes_accessed=bytes_accessed)

    compiler_params = pltpu.CompilerParams(
        dimension_semantics=("parallel",),
        vmem_limit_bytes=vmem_limit_bytes,
    )

    out = pl.pallas_call(
        goal_encoder_kernel,
        out_shape=jax.ShapeDtypeStruct((B, H), out_dtype),
        grid_spec=pltpu.PrefetchScalarGridSpec(
            num_scalar_prefetch=0,
            grid=grid,
            in_specs=[
                pl.BlockSpec((tb, K), lambda i: (i, 0)),   # goals tile (streamed)
                pl.BlockSpec((K, H), lambda i: (0, 0)),    # full weight (resident)
                pl.BlockSpec((1, H), lambda i: (0, 0)),    # bias row (resident)
            ],
            out_specs=pl.BlockSpec((tb, H), lambda i: (i, 0)),
        ),
        compiler_params=compiler_params,
        cost_estimate=cost,
    )(goals, w_prepped, b_prepped)
    return out


def reference_forward(goals, weight, bias):
    return jnp.maximum(goals @ weight + bias, 0.0)


if __name__ == "__main__":
    # GoalEncoder(hidden_size=32): Linear(1024, 32) + ReLU on CLIP text features.
    B, K, HIDDEN = 8, 1024, 32

    key = jax.random.PRNGKey(0)
    k_x, k_w, k_b = jax.random.split(key, 3)

    goals = jax.random.normal(k_x, (B, K), dtype=jnp.float32)
    bound = 1.0 / (K ** 0.5)
    weight = jax.random.uniform(k_w, (K, HIDDEN), jnp.float32,
                                minval=-bound, maxval=bound)
    bias = jax.random.uniform(k_b, (HIDDEN,), jnp.float32,
                              minval=-bound, maxval=bound)

    # One-time param prep (module init), not per forward call.
    w_p, b_p = prepare_goal_encoder_params(weight, bias)

    # --- literal BabyAI shape through the Pallas path.
    out = goal_encoder_forward(goals, w_p, b_p)
    out = jax.block_until_ready(out)
    assert out.shape == (B, HIDDEN)

    # Tight check vs a reference doing the kernel's exact math
    # (bf16 operands, f32 accumulate, f32 bias + ReLU).
    x_bf = goals.astype(jnp.bfloat16).astype(jnp.float32)
    w_bf = weight.astype(jnp.bfloat16).astype(jnp.float32)
    ref_bf = jnp.maximum(x_bf @ w_bf + bias, 0.0)
    assert jnp.allclose(out, ref_bf, atol=1e-3, rtol=1e-3), \
        float(jnp.max(jnp.abs(out - ref_bf)))

    # Loose check vs the full-f32 PyTorch-semantics reference.
    ref_f32 = reference_forward(goals, weight, bias)
    assert jnp.allclose(out, ref_f32, atol=2e-2, rtol=2e-2), \
        float(jnp.max(jnp.abs(out - ref_f32)))

    # --- multi-step grid with a partial last block (B % tb != 0).
    B2 = 40
    goals2 = jax.random.normal(jax.random.PRNGKey(1), (B2, K), dtype=jnp.float32)
    out2 = jax.block_until_ready(goal_encoder_forward(goals2, w_p, b_p, tb=16))
    assert out2.shape == (B2, HIDDEN)
    ref2 = jnp.maximum(goals2.astype(jnp.bfloat16).astype(jnp.float32) @ w_bf + bias, 0.0)
    assert jnp.allclose(out2, ref2, atol=1e-3, rtol=1e-3), \
        float(jnp.max(jnp.abs(out2 - ref2)))

    print("KERNEL_OK")
</pallas_src>

<mosaic_0001>
module attributes {stable_mosaic.version = 11 : i64} {
  func.func @goal_encoder_kernel(%arg0: i32, %arg1: memref<8x1024xf32, #tpu.memory_space<vmem>>, %arg2: memref<1024x32xbf16, #tpu.memory_space<vmem>>, %arg3: memref<1x32xf32, #tpu.memory_space<vmem>>, %arg4: memref<8x32xf32, #tpu.memory_space<vmem>>) attributes {dimension_semantics = [#tpu.dimension_semantics<parallel>], iteration_bounds = array<i64: 1>, scalar_prefetch = 0 : i64, scratch_operands = 0 : i64, tpu.core_type = #tpu.core_type<tc>, window_params = [{transform_indices = @transform_0, window_bounds = array<i64: 8, 1024>}, {pipeline_mode = #tpu.pipeline_mode<synchronous>, transform_indices = @transform_1, window_bounds = array<i64: 1024, 32>}, {pipeline_mode = #tpu.pipeline_mode<synchronous>, transform_indices = @transform_2, window_bounds = array<i64: 1, 32>}, {transform_indices = @transform_3, window_bounds = array<i64: 8, 32>}]} {
    %c0 = arith.constant 0 : index
    %c0_0 = arith.constant 0 : index
    %0 = vector.load %arg1[%c0, %c0_0] : memref<8x1024xf32, #tpu.memory_space<vmem>>, vector<8x1024xf32>
    %1 = arith.truncf %0 : vector<8x1024xf32> to vector<8x1024xbf16>
    %c0_1 = arith.constant 0 : index
    %c0_2 = arith.constant 0 : index
    %2 = vector.load %arg2[%c0_1, %c0_2] : memref<1024x32xbf16, #tpu.memory_space<vmem>>, vector<1024x32xbf16>
    %cst = arith.constant dense<0.000000e+00> : vector<8x32xf32>
    %3 = tpu.matmul %1, %2, %cst {dimension_numbers = #tpu.dot_dimension_numbers<[1], [0], [0], [1], [0, 0, 1, 1], [], []>} : vector<8x1024xbf16>, vector<1024x32xbf16>, vector<8x32xf32> -> vector<8x32xf32>
    %c0_3 = arith.constant 0 : index
    %c0_4 = arith.constant 0 : index
    %4 = vector.load %arg3[%c0_3, %c0_4] : memref<1x32xf32, #tpu.memory_space<vmem>>, vector<1x32xf32>
    %5 = vector.broadcast %4 : vector<1x32xf32> to vector<8x32xf32>
    %6 = arith.addf %3, %5 : vector<8x32xf32>
    %cst_5 = arith.constant 0.000000e+00 : f32
    %7 = vector.broadcast %cst_5 : f32 to vector<8x32xf32>
    %8 = arith.maximumf %6, %7 : vector<8x32xf32>
    %c0_6 = arith.constant 0 : index
    %c0_7 = arith.constant 0 : index
    %9 = vector.load %arg4[%c0_6, %c0_7] : memref<8x32xf32, #tpu.memory_space<vmem>>, vector<8x32xf32>
    tpu.vector_store %arg4[%c0_6, %c0_7], %8 {strides = array<i32>} : memref<8x32xf32, #tpu.memory_space<vmem>>, vector<8x32xf32>,
    return
  }
  func.func @transform_0(%arg0: i32) -> (i32, i32) {
    %c0_i32 = arith.constant 0 : i32
    %c0_i32_0 = arith.constant 0 : i32
    return %arg0, %c0_i32 : i32, i32
  }
  func.func @transform_1(%arg0: i32) -> (i32, i32) {
    %c0_i32 = arith.constant 0 : i32
    %c0_i32_0 = arith.constant 0 : i32
    %c0_i32_1 = arith.constant 0 : i32
    return %c0_i32, %c0_i32_0 : i32, i32
  }
  func.func @transform_2(%arg0: i32) -> (i32, i32) {
    %c0_i32 = arith.constant 0 : i32
    %c0_i32_0 = arith.constant 0 : i32
    %c0_i32_1 = arith.constant 0 : i32
    return %c0_i32, %c0_i32_0 : i32, i32
  }
  func.func @transform_3(%arg0: i32) -> (i32, i32) {
    %c0_i32 = arith.constant 0 : i32
    %c0_i32_0 = arith.constant 0 : i32
    return %arg0, %c0_i32 : i32, i32
  }
}

</mosaic_0001>

<bundles_post_ra>
// kernel: tpu_custom_call.1
= control target key start
LH: loop header
LB: loop body
LE: loop exit
PB: predicated region body
PF: predicated region fallthrough
CT: control target
= control target key end

     0   :  { %s1222_s0 = inlined_call_operand.vmem [shape: f32[8,1024], index: 0, kind: input, shape index: {}]   ;;  %s1223_s1 = inlined_call_operand.vmem [shape: bf16[1024,32], index: 1, kind: input, shape index: {}]   ;;  %s1224_s2 = inlined_call_operand.vmem [shape: f32[1,32], index: 2, kind: input, shape index: {}]   ;;  %s1225_s3 = inlined_call_operand.hbm [shape: f32[8,32], index: 3, kind: output, shape index: {}]  }
   0x1   :  { %v882_v0 = vld [vmem:[%s1223_s1 + $0x40] sm:$0xff]   ;;  %v886_v4 = vld [vmem:[%s1223_s1 + $0x48] sm:$0xff]   ;;  %v890_v8 = vld [vmem:[%s1223_s1 + $0x50] sm:$0xff]  }
   0x2   :  { %v883_v1 = vld [vmem:[%s1223_s1 + $0xc0] sm:$0xff]   ;;  %793 = vmatprep.subr.bf16.mxu0 %v882_v0  ;;  %v887_v5 = vld [vmem:[%s1223_s1 + $0xc8] sm:$0xff]   ;;  %v891_v9 = vld [vmem:[%s1223_s1 + $0xd0] sm:$0xff]  }
   0x3   :  { %v884_v2 = vld [vmem:[%s1223_s1] sm:$0xff]   ;;  %815 = vmatprep.subr.bf16.mxu1 %v883_v1  ;;  %v888_v6 = vld [vmem:[%s1223_s1 + $0x8] sm:$0xff]   ;;  %v892_v10 = vld [vmem:[%s1223_s1 + $0x10] sm:$0xff]  }
   0x4   :  { %v885_v3 = vld [vmem:[%s1223_s1 + $0x80] sm:$0xff]   ;;  %794 = vmatpush3.bf16.msra.mxu0 %v884_v2  ;;  %v889_v7 = vld [vmem:[%s1223_s1 + $0x88] sm:$0xff]   ;;  %v893_v11 = vld [vmem:[%s1223_s1 + $0x90] sm:$0xff]  }
   0x5   :  { %816 = vmatpush3.bf16.msra.mxu1 %v885_v3  ;;  %795 = vmatprep.subr.bf16.mxu0 %v886_v4  ;;  %v894_v12 = vld [vmem:[%s1223_s1 + $0x58] sm:$0xff]   ;;  %v898_v16 = vld [vmem:[%s1223_s1 + $0x60] sm:$0xff]   ;;  %v902_v20 = vld [vmem:[%s1223_s1 + $0x68] sm:$0xff]  }
   0x6   :  { %817 = vmatprep.subr.bf16.mxu1 %v887_v5  ;;  %v895_v13 = vld [vmem:[%s1223_s1 + $0xd8] sm:$0xff]   ;;  %v899_v17 = vld [vmem:[%s1223_s1 + $0xe0] sm:$0xff]   ;;  %v903_v21 = vld [vmem:[%s1223_s1 + $0xe8] sm:$0xff]  }
   0x7   :  { %v896_v14 = vld [vmem:[%s1223_s1 + $0x18] sm:$0xff]   ;;  %v900_v18 = vld [vmem:[%s1223_s1 + $0x20] sm:$0xff]   ;;  %v904_v22 = vld [vmem:[%s1223_s1 + $0x28] sm:$0xff]  }
   0x8   :  { %796 = vmatpush3.bf16.msra.mxu0 %v888_v6  ;;  %v897_v15 = vld [vmem:[%s1223_s1 + $0x98] sm:$0xff]   ;;  %v901_v19 = vld [vmem:[%s1223_s1 + $0xa0] sm:$0xff]   ;;  %v905_v23 = vld [vmem:[%s1223_s1 + $0xa8] sm:$0xff]  }
   0x9   :  { %818 = vmatpush3.bf16.msra.mxu1 %v889_v7  ;;  %797 = vmatprep.subr.bf16.mxu0 %v890_v8  ;;  %v906_v24 = vld [vmem:[%s1223_s1 + $0x70] sm:$0xff]   ;;  %v910_v28 = vld [vmem:[%s1223_s1 + $0x78] sm:$0xff]   ;;  %v17_v32 = vld [vmem:[%s1222_s0 + $0x8] sm:$0xff] }
   0xa   :  { %819 = vmatprep.subr.bf16.mxu1 %v891_v9  ;;  %v907_v25 = vld [vmem:[%s1223_s1 + $0xf0] sm:$0xff]   ;;  %v911_v29 = vld [vmem:[%s1223_s1 + $0xf8] sm:$0xff]   ;;  %v16_v34 = vld [vmem:[%s1222_s0] sm:$0xff]  ;;  %v25_v35 = vpack.c.bf16 %v17_v32, %v17_v32 }
   0xb   :  { %v908_v26 = vld [vmem:[%s1223_s1 + $0x30] sm:$0xff]   ;;  %v912_v30 = vld [vmem:[%s1223_s1 + $0x38] sm:$0xff]   ;;  %v24_v37 = vpack.c.bf16 %v16_v34, %v16_v34  ;;  %v914_v40 = vld [vmem:[%s1223_s1 + $0x140] sm:$0xff]  }
   0xc   :  { %798 = vmatpush3.bf16.msra.mxu0 %v892_v10  ;;  %v909_v27 = vld [vmem:[%s1223_s1 + $0xb0] sm:$0xff]   ;;  %v913_v31 = vld [vmem:[%s1223_s1 + $0xb8] sm:$0xff]   ;;  %583 = vmatprep.mubr.bf16.mxu0 %v25_v35  ;;  %v915_v41 = vld [vmem:[%s1223_s1 + $0x1c0] sm:$0xff]  }
   0xd   :  { %820 = vmatpush3.bf16.msra.mxu1 %v893_v11  ;;  %799 = vmatprep.subr.bf16.mxu0 %v894_v12  ;;  %v19_v33 = vld [vmem:[%s1222_s0 + $0x18] sm:$0xff]  ;;  %v18_v38 = vld [vmem:[%s1222_s0 + $0x10] sm:$0xff]  ;;  %v916_v42 = vld [vmem:[%s1223_s1 + $0x100] sm:$0xff]  }
   0xe   :  { %821 = vmatprep.subr.bf16.mxu1 %v895_v13  ;;  %v27_v36 = vpack.c.bf16 %v19_v33, %v19_v33  ;;  %v26_v39 = vpack.c.bf16 %v18_v38, %v18_v38  ;;  %v917_v43 = vld [vmem:[%s1223_s1 + $0x180] sm:$0xff]   ;;  %v918_v44 = vld [vmem:[%s1223_s1 + $0x148] sm:$0xff]   ;;  %v922_v48 = vld [vmem:[%s1223_s1 + $0x150] sm:$0xff]  }
   0xf   :  { %v919_v45 = vld [vmem:[%s1223_s1 + $0x1c8] sm:$0xff]   ;;  %v923_v49 = vld [vmem:[%s1223_s1 + $0x1d0] sm:$0xff]   ;;  %v926_v52 = vld [vmem:[%s1223_s1 + $0x158] sm:$0xff]  }
  0x10   :  { %800 = vmatpush3.bf16.msra.mxu0 %v896_v14  ;;  %623 = vmatprep.mubr.bf16.mxu1 %v27_v36  ;;  %v920_v46 = vld [vmem:[%s1223_s1 + $0x108] sm:$0xff]   ;;  %v924_v50 = vld [vmem:[%s1223_s1 + $0x110] sm:$0xff]   ;;  %v927_v53 = vld [vmem:[%s1223_s1 + $0x1d8] sm:$0xff]  }
  0x11   :  { %822 = vmatpush3.bf16.msra.mxu1 %v897_v15  ;;  %801 = vmatprep.subr.bf16.mxu0 %v898_v16  ;;  %v921_v47 = vld [vmem:[%s1223_s1 + $0x188] sm:$0xff]   ;;  %v925_v51 = vld [vmem:[%s1223_s1 + $0x190] sm:$0xff]   ;;  %v928_v54 = vld [vmem:[%s1223_s1 + $0x118] sm:$0xff]  }
  0x12   :  { %823 = vmatprep.subr.bf16.mxu1 %v899_v17  ;;  %v929_v55 = vld [vmem:[%s1223_s1 + $0x198] sm:$0xff]   ;;  %v930_v56 = vld [vmem:[%s1223_s1 + $0x160] sm:$0xff]   ;;  %v934_v60 = vld [vmem:[%s1223_s1 + $0x168] sm:$0xff]  }
  0x13   :  { %v931_v57 = vld [vmem:[%s1223_s1 + $0x1e0] sm:$0xff]   ;;  %v935_v61 = vld [vmem:[%s1223_s1 + $0x1e8] sm:$0xff]   ;;  %v938_v0 = vld [vmem:[%s1223_s1 + $0x170] sm:$0xff]  }
  0x14   :  { %802 = vmatpush3.bf16.msra.mxu0 %v900_v18  ;;  %v932_v58 = vld [vmem:[%s1223_s1 + $0x120] sm:$0xff]   ;;  %v936_v62 = vld [vmem:[%s1223_s1 + $0x128] sm:$0xff]   ;;  %v939_v1 = vld [vmem:[%s1223_s1 + $0x1f0] sm:$0xff]  }
  0x15   :  { %824 = vmatpush3.bf16.msra.mxu1 %v901_v19  ;;  %803 = vmatprep.subr.bf16.mxu0 %v902_v20  ;;  %v933_v59 = vld [vmem:[%s1223_s1 + $0x1a0] sm:$0xff]   ;;  %v937_v63 = vld [vmem:[%s1223_s1 + $0x1a8] sm:$0xff]   ;;  %v940_v2 = vld [vmem:[%s1223_s1 + $0x130] sm:$0xff]  }
  0x16   :  { %825 = vmatprep.subr.bf16.mxu1 %v903_v21  ;;  %v941_v3 = vld [vmem:[%s1223_s1 + $0x1b0] sm:$0xff]   ;;  %v942_v4 = vld [vmem:[%s1223_s1 + $0x178] sm:$0xff]   ;;  %v21_v8 = vld [vmem:[%s1222_s0 + $0x28] sm:$0xff] }
  0x17   :  { %v943_v5 = vld [vmem:[%s1223_s1 + $0x1f8] sm:$0xff]   ;;  %v29_v10 = vpack.c.bf16 %v21_v8, %v21_v8  ;;  %v20_v12 = vld [vmem:[%s1222_s0 + $0x20] sm:$0xff]  ;;  %v22_v13 = vld [vmem:[%s1222_s0 + $0x30] sm:$0xff] }
  0x18   :  { %804 = vmatpush3.bf16.msra.mxu0 %v904_v22  ;;  %v944_v6 = vld [vmem:[%s1223_s1 + $0x138] sm:$0xff]  }
  0x19   :  { %826 = vmatpush3.bf16.msra.mxu1 %v905_v23  ;;  %805 = vmatprep.subr.bf16.mxu0 %v906_v24  ;;  %v945_v7 = vld [vmem:[%s1223_s1 + $0x1b8] sm:$0xff]  }
  0x1a   :  { %827 = vmatprep.subr.bf16.mxu1 %v907_v25  ;;  %v23_v9 = vld [vmem:[%s1222_s0 + $0x38] sm:$0xff] }
  0x1b   :  { %v31_v11 = vpack.c.bf16 %v23_v9, %v23_v9 }
  0x1c   :  { %806 = vmatpush3.bf16.msra.mxu0 %v908_v26 }
  0x1d   :  { %828 = vmatpush3.bf16.msra.mxu1 %v909_v27  ;;  %807 = vmatprep.subr.bf16.mxu0 %v910_v28 }
  0x1e   :  { %829 = vmatprep.subr.bf16.mxu1 %v911_v29 }
  0x20   :  { %808 = vmatpush3.bf16.msra.mxu0 %v912_v30 }
  0x21   :  { %830 = vmatpush3.bf16.msra.mxu1 %v913_v31  ;;  %837 = vmatprep.subr.bf16.mxu0 %v914_v40 }
  0x22   :  { %859 = vmatprep.subr.bf16.mxu1 %v915_v41 }
  0x23   :  { %584 = vmatmul.mubr.bf16.vlgmr.msra.gmra.mrb[0].mxu0 %v24_v37 }
  0x24   :  { %624 = vmatmul.mubr.bf16.vlgmr.msra.gmra.mrb[0].mxu1 %v26_v39  ;;  %838 = vmatpush3.bf16.msra.mxu0 %v916_v42 }
  0x25   :  { %860 = vmatpush3.bf16.msra.mxu1 %v917_v43  ;;  %839 = vmatprep.subr.bf16.mxu0 %v918_v44 }
  0x26   :  { %861 = vmatprep.subr.bf16.mxu1 %v919_v45 }
  0x28   :  { %840 = vmatpush3.bf16.msra.mxu0 %v920_v46 }
  0x29   :  { %862 = vmatpush3.bf16.msra.mxu1 %v921_v47  ;;  %841 = vmatprep.subr.bf16.mxu0 %v922_v48 }
  0x2a   :  { %863 = vmatprep.subr.bf16.mxu1 %v923_v49 }
  0x2c   :  { %842 = vmatpush3.bf16.msra.mxu0 %v924_v50 }
  0x2d   :  { %864 = vmatpush3.bf16.msra.mxu1 %v925_v51  ;;  %843 = vmatprep.subr.bf16.mxu0 %v926_v52 }
  0x2e   :  { %865 = vmatprep.subr.bf16.mxu1 %v927_v53 }
  0x30   :  { %844 = vmatpush3.bf16.msra.mxu0 %v928_v54 }
  0x31   :  { %866 = vmatpush3.bf16.msra.mxu1 %v929_v55  ;;  %845 = vmatprep.subr.bf16.mxu0 %v930_v56 }
  0x32   :  { %867 = vmatprep.subr.bf16.mxu1 %v931_v57 }
  0x34   :  { %846 = vmatpush3.bf16.msra.mxu0 %v932_v58 }
  0x35   :  { %868 = vmatpush3.bf16.msra.mxu1 %v933_v59  ;;  %847 = vmatprep.subr.bf16.mxu0 %v934_v60 }
  0x36   :  { %869 = vmatprep.subr.bf16.mxu1 %v935_v61 }
  0x38   :  { %848 = vmatpush3.bf16.msra.mxu0 %v936_v62 }
  0x39   :  { %870 = vmatpush3.bf16.msra.mxu1 %v937_v63  ;;  %849 = vmatprep.subr.bf16.mxu0 %v938_v0 }
  0x3a   :  { %871 = vmatprep.subr.bf16.mxu1 %v939_v1 }
  0x3c   :  { %850 = vmatpush3.bf16.msra.mxu0 %v940_v2 }
  0x3d   :  { %872 = vmatpush3.bf16.msra.mxu1 %v941_v3  ;;  %851 = vmatprep.subr.bf16.mxu0 %v942_v4 }
  0x3e   :  { %873 = vmatprep.subr.bf16.mxu1 %v943_v5 }
  0x40   :  { %852 = vmatpush3.bf16.msra.mxu0 %v944_v6 }
  0x41   :  { %8 = vsyncpa [#allocation3], 0  ;;  %874 = vmatpush3.bf16.msra.mxu1 %v945_v7  ;;  %v28_v14 = vpack.c.bf16 %v20_v12, %v20_v12  ;;  %v30_v15 = vpack.c.bf16 %v22_v13, %v22_v13  ;;  %663 = vmatprep.mubr.bf16.mxu0 %v29_v10  ;;  %v728_v18 = vld [vmem:[%s1224_s2] ss:$0 sm:$0xff]  ;;  %s970_s0 = smov [#allocation2]   ;;  %vm712_vm0 = vcmask 261120  }
  0x42   :  { %703 = vmatprep.mubr.bf16.mxu1 %v31_v11  ;;  %s720_s2 = sshll.u32 %s970_s0, 4  ;;  %s721_s2 = int_to_ptr.vmem [resolvable:$true] %s720_s2 }
  0x43   :  { %664 = vmatmul.mubr.bf16.vlgmr.msra.gmra.mrb[4].mxu0 %v28_v14  ;;  %s946_s22 = scalar_lea.vmem %s721_s2, 128  ;;  %p951_p1 = scmp.lt.s32.totalorder %s721_s2, %s721_s2 }
  0x44   :  { %704 = vmatmul.mubr.bf16.vlgmr.msra.gmra.mrb[4].mxu1 %v30_v15  ;;  %p947_p0 = scmp.ne.s32.totalorder %s721_s2, %s946_s22  ;;  %p952_p2 = scmp.lt.s32.totalorder %s946_s22, %s946_s22 }
  0x46   :  { %p953_p3 = por %p952_p2, %p951_p1 }
  0x48   :  { %p954_p4 = pnand %p953_p3, %p947_p0 }
  0xf6   :  { %v809_v16 = vpop.f32.mrb[0].mxu0 }
  0xf7   :  { %v831_v17 = vpop.f32.mrb[0].mxu1  ;;  %v810_v19 = vpop.f32.mrb[1].mxu0 }
  0xf8   :  { %v832_v20 = vpop.f32.mrb[1].mxu1  ;;  %v811_v21 = vadd.f32 %v810_v19, %v809_v16  ;;  %v812_v23 = vpop.f32.mrb[2].mxu0 }
  0xf9   :  { %v833_v22 = vadd.f32 %v832_v20, %v831_v17  ;;  %v834_v24 = vpop.f32.mrb[2].mxu1  ;;  %v813_v25 = vpop.f32.mrb[3].mxu0 }
  0xfa   :  { %v835_v26 = vpop.f32.mrb[3].mxu1  ;;  %v586_v27 = vadd.f32 %v811_v21, %v728_v18 }
  0xfc   :  { %v626_v28 = vadd.f32 %v833_v22, %v586_v27 }
 0x116   :  { %v853_v29 = vpop.f32.mrb[4].mxu0 }
 0x117   :  { %v875_v30 = vpop.f32.mrb[4].mxu1  ;;  %v854_v31 = vpop.f32.mrb[5].mxu0 }
 0x118   :  { %v855_v32 = vadd.f32 %v854_v31, %v853_v29  ;;  %v876_v33 = vpop.f32.mrb[5].mxu1  ;;  %v856_v34 = vpop.f32.mrb[6].mxu0 }
 0x119   :  { %v877_v35 = vadd.f32 %v876_v33, %v875_v30  ;;  %v878_v36 = vpop.f32.mrb[6].mxu1  ;;  %v857_v37 = vpop.f32.mrb[7].mxu0 }
 0x11a   :  { %v666_v38 = vadd.f32 %v855_v32, %v626_v28  ;;  %v879_v39 = vpop.f32.mrb[7].mxu1 }
 0x11c   :  { %v706_v40 = vadd.f32 %v877_v35, %v666_v38 }
 0x11e   :  { %v711_v41 = vmax.f32 %v706_v40, 0.0 }
 0x120   :  { %713 = vst.msk [vmem:[#allocation2] sm:$0xff] %vm712_vm0, %v711_v41 }
 0x121   :  { %957 = shalt.err (!%p954_p4)
}
 0x122   :  { %s958_s25 = scalar_lea.hbm %s1225_s3, 128 }
 0x123   :  { %p959_p5 = scmp.ne.s32.totalorder %s1225_s3, %s958_s25  ;;  %p962_p6 = scmp.lt.u32.totalorder %s958_s25, %s1225_s3 }
 0x125   :  { %p964_p7 = pnand %p962_p6, %p959_p5 }
 0x127   :  { %967 = shalt.err (!%p964_p7)
}
 0x128   :  { %723 = dma.vmem_to_hbm [thread:$0]  %s721_s2, 128, %s1225_s3, [#allocation3]  }
 0x129   :  { %968 = dma.done.wait [#allocation3], 128  }
 0x12a   :  { %969 = vsyncadd [#allocation3], 4294967168 }
 0x12b   :  { %727 = vsyncpa [#allocation3], 1 }

</bundles_post_ra>
